<compile_context>
chip_gen: v7x
topology: tpu7x:2x2x1
jax: 0.10.0
libtpu: 0.0.40
codegen_flags: <defaults>
</compile_context>

<pallas_src>
import math

import jax
import jax.numpy as jnp
import numpy as np
from jax.experimental import pallas as pl
from jax.experimental.pallas import tpu as pltpu

CIN, COUT, K = 3, 8, 3
STRIDE, PAD, OUT_PAD = 1, 1, 1
PAD_LO = K - 1 - PAD                  # 1  (top/left)
PAD_HI = K - 1 - PAD + OUT_PAD        # 2  (bottom/right, includes output_padding)
TAPS = K * K * CIN                    # 27
LANE = 128
TL_MAX = 4096                         # cap per-tile lane width (multiple of 128)


def _kernel(w_ref, b_ref, p_ref, o_ref):
    # w_ref: (COUT, TAPS) bf16 VMEM — flipped/transposed weight, resident
    # b_ref: (COUT, 1)    f32  VMEM — bias column, resident
    # p_ref: (TAPS, tl)   bf16 VMEM — im2col patches, lane-dense tile
    # o_ref: (COUT, tl)   f32  VMEM — lane-dense output tile
    acc = jnp.dot(w_ref[...], p_ref[...], preferred_element_type=jnp.float32)
    acc = acc + b_ref[...]                      # bias broadcast over lanes
    # sigmoid: exp and approx reciprocal both run on the otherwise-idle EUP slot
    o_ref[...] = pl.reciprocal(1.0 + jnp.exp(-acc), approx=True)


def conv_transpose_sigmoid(x, w_pt, b):
    """x: (N, CIN, H, W) f32; w_pt: (CIN, COUT, K, K) ConvTranspose2d weight; b: (COUT,)."""
    N, _, H, W = x.shape
    Ho = (H - 1) * STRIDE - 2 * PAD + K + OUT_PAD   # = H + 1
    Wo = (W - 1) * STRIDE - 2 * PAD + K + OUT_PAD   # = W + 1
    L = N * Ho * Wo

    # ---- wrapper-side layout plumbing (minimal number of materializing ops) ----
    # channel-major so the tap stack reshapes contiguously to (TAPS, L)
    xt = jnp.transpose(x.astype(jnp.bfloat16), (1, 0, 2, 3))        # (CIN, N, H, W)
    xpad = jnp.pad(xt, ((0, 0), (0, 0), (PAD_LO, PAD_HI), (PAD_LO, PAD_HI)))

    # im2col via 9 shifted views; tap index = (kh*K + kw)*CIN + ci
    views = [xpad[:, :, kh:kh + Ho, kw:kw + Wo]
             for kh in range(K) for kw in range(K)]                  # each (CIN, N, Ho, Wo)
    patches = jnp.stack(views, axis=0).reshape(TAPS, L)              # (27, L) bf16

    # lane padding: single tile up to TL_MAX lanes, else cdiv(L, TL_MAX) tiles
    lp_min = math.ceil(L / LANE) * LANE
    tl = min(lp_min, TL_MAX)
    num_tiles = math.ceil(lp_min / tl)
    lp = num_tiles * tl
    patches = jnp.pad(patches, ((0, 0), (0, lp - L)))

    # weight: w_conv[kh,kw,ci,co] = w_pt[ci,co,K-1-kh,K-1-kw]  (flip + transpose)
    w_conv = jnp.flip(w_pt, axis=(2, 3)).transpose(2, 3, 0, 1)       # (K, K, CIN, COUT)
    w_mat = w_conv.reshape(TAPS, COUT).T.astype(jnp.bfloat16)        # (COUT, 27)
    b_col = b.astype(jnp.float32).reshape(COUT, 1)                   # (COUT, 1)

    out_flat = pl.pallas_call(
        _kernel,
        out_shape=jax.ShapeDtypeStruct((COUT, lp), jnp.float32),
        grid=(num_tiles,),
        in_specs=[
            pl.BlockSpec((COUT, TAPS), lambda i: (0, 0)),   # weight stays resident
            pl.BlockSpec((COUT, 1), lambda i: (0, 0)),      # bias stays resident
            pl.BlockSpec((TAPS, tl), lambda i: (0, i)),
        ],
        out_specs=pl.BlockSpec((COUT, tl), lambda i: (0, i)),
        compiler_params=pltpu.CompilerParams(
            dimension_semantics=("parallel",)),
    )(w_mat, b_col, patches)

    # crop lane padding and restore NCHW
    out = out_flat[:, :L].reshape(COUT, N, Ho, Wo).transpose(1, 0, 2, 3)
    return out


def reference(x, w_pt, b):
    """Plain-JAX f32 reference using an independent padded-direct-conv formulation."""
    N, _, H, W = x.shape
    Ho, Wo = H + 1, W + 1
    xpad = jnp.pad(x, ((0, 0), (0, 0), (PAD_LO, PAD_HI), (PAD_LO, PAD_HI)))
    w_conv = jnp.flip(w_pt, axis=(2, 3)).transpose(2, 3, 0, 1)   # (K, K, CIN, COUT)
    out = jnp.zeros((N, COUT, Ho, Wo), jnp.float32) + b[None, :, None, None]
    for kh in range(K):
        for kw in range(K):
            out = out + jnp.einsum(
                "ncij,cf->nfij", xpad[:, :, kh:kh + Ho, kw:kw + Wo], w_conv[kh, kw]
            )
    return 1.0 / (1.0 + jnp.exp(-out))


if __name__ == "__main__":
    key = jax.random.PRNGKey(0)
    kx, kw, kb = jax.random.split(key, 3)

    N, H, W = 2, 16, 16
    x = jax.random.normal(kx, (N, CIN, H, W), dtype=jnp.float32)

    # deterministic parameter init (PyTorch-style kaiming-uniform bounds)
    fan_in = COUT * K * K
    bound = 1.0 / float(np.sqrt(fan_in))
    w_pt = jax.random.uniform(kw, (CIN, COUT, K, K), minval=-bound, maxval=bound,
                              dtype=jnp.float32)
    b = jax.random.uniform(kb, (COUT,), minval=-bound, maxval=bound, dtype=jnp.float32)

    out = conv_transpose_sigmoid(x, w_pt, b)
    out = jax.block_until_ready(out)

    assert out.shape == (N, COUT, H + 1, W + 1), out.shape
    ref = reference(x, w_pt, b)
    # tolerance accounts for bf16 MXU inputs + approx (EUP) reciprocal in sigmoid
    np.testing.assert_allclose(np.asarray(out), np.asarray(ref), rtol=4e-3, atol=4e-3)

    print("KERNEL_OK")
</pallas_src>

<mosaic_0001>
module attributes {stable_mosaic.version = 11 : i64} {
  func.func @_kernel(%arg0: i32, %arg1: memref<8x27xbf16, #tpu.memory_space<vmem>>, %arg2: memref<8x1xf32, #tpu.memory_space<vmem>>, %arg3: memref<27x640xbf16, #tpu.memory_space<vmem>>, %arg4: memref<8x640xf32, #tpu.memory_space<vmem>>) attributes {dimension_semantics = [#tpu.dimension_semantics<parallel>], iteration_bounds = array<i64: 1>, scalar_prefetch = 0 : i64, scratch_operands = 0 : i64, tpu.core_type = #tpu.core_type<tc>, window_params = [{pipeline_mode = #tpu.pipeline_mode<synchronous>, transform_indices = @transform_0, window_bounds = array<i64: 8, 27>}, {pipeline_mode = #tpu.pipeline_mode<synchronous>, transform_indices = @transform_1, window_bounds = array<i64: 8, 1>}, {transform_indices = @transform_2, window_bounds = array<i64: 27, 640>}, {transform_indices = @transform_3, window_bounds = array<i64: 8, 640>}]} {
    %c0 = arith.constant 0 : index
    %c0_0 = arith.constant 0 : index
    %0 = vector.load %arg1[%c0, %c0_0] : memref<8x27xbf16, #tpu.memory_space<vmem>>, vector<8x27xbf16>
    %c0_1 = arith.constant 0 : index
    %c0_2 = arith.constant 0 : index
    %1 = vector.load %arg3[%c0_1, %c0_2] : memref<27x640xbf16, #tpu.memory_space<vmem>>, vector<27x640xbf16>
    %cst = arith.constant dense<0.000000e+00> : vector<8x640xf32>
    %2 = tpu.matmul %0, %1, %cst {dimension_numbers = #tpu.dot_dimension_numbers<[1], [0], [0], [1], [0, 0, 1, 1], [], []>} : vector<8x27xbf16>, vector<27x640xbf16>, vector<8x640xf32> -> vector<8x640xf32>
    %c0_3 = arith.constant 0 : index
    %c0_4 = arith.constant 0 : index
    %3 = vector.load %arg2[%c0_3, %c0_4] : memref<8x1xf32, #tpu.memory_space<vmem>>, vector<8x1xf32>
    %4 = vector.broadcast %3 : vector<8x1xf32> to vector<8x640xf32>
    %5 = arith.addf %2, %4 : vector<8x640xf32>
    %cst_5 = arith.constant 0.000000e+00 : f32
    %6 = vector.broadcast %cst_5 : f32 to vector<8x640xf32>
    %7 = arith.subf %6, %5 : vector<8x640xf32>
    %8 = math.exp %7 : vector<8x640xf32>
    %cst_6 = arith.constant 1.000000e+00 : f32
    %9 = vector.broadcast %cst_6 : f32 to vector<8x640xf32>
    %10 = arith.addf %9, %8 : vector<8x640xf32>
    %11 = tpu.reciprocal %10 {approx = true} : vector<8x640xf32> -> vector<8x640xf32>
    %c0_7 = arith.constant 0 : index
    %c0_8 = arith.constant 0 : index
    %12 = vector.load %arg4[%c0_7, %c0_8] : memref<8x640xf32, #tpu.memory_space<vmem>>, vector<8x640xf32>
    tpu.vector_store %arg4[%c0_7, %c0_8], %11 {strides = array<i32>} : memref<8x640xf32, #tpu.memory_space<vmem>>, vector<8x640xf32>,
    return
  }
  func.func @transform_0(%arg0: i32) -> (i32, i32) {
    %c0_i32 = arith.constant 0 : i32
    %c0_i32_0 = arith.constant 0 : i32
    %c0_i32_1 = arith.constant 0 : i32
    return %c0_i32, %c0_i32_0 : i32, i32
  }
  func.func @transform_1(%arg0: i32) -> (i32, i32) {
    %c0_i32 = arith.constant 0 : i32
    %c0_i32_0 = arith.constant 0 : i32
    %c0_i32_1 = arith.constant 0 : i32
    return %c0_i32, %c0_i32_0 : i32, i32
  }
  func.func @transform_2(%arg0: i32) -> (i32, i32) {
    %c0_i32 = arith.constant 0 : i32
    %c0_i32_0 = arith.constant 0 : i32
    return %c0_i32, %arg0 : i32, i32
  }
  func.func @transform_3(%arg0: i32) -> (i32, i32) {
    %c0_i32 = arith.constant 0 : i32
    %c0_i32_0 = arith.constant 0 : i32
    return %c0_i32, %arg0 : i32, i32
  }
}

</mosaic_0001>

<bundles_post_ra>
// kernel: tpu_custom_call.1
= control target key start
LH: loop header
LB: loop body
LE: loop exit
PB: predicated region body
PF: predicated region fallthrough
CT: control target
= control target key end

     0   :  { %8 = vsyncpa [#allocation3], 0  ;;  %s462_s0 = inlined_call_operand.vmem [shape: bf16[8,27], index: 0, kind: input, shape index: {}]   ;;  %s463_s1 = inlined_call_operand.vmem [shape: f32[8,1], index: 1, kind: input, shape index: {}]   ;;  %s464_s2 = inlined_call_operand.hbm [shape: bf16[27,640], index: 2, kind: input, shape index: {}]   ;;  %s465_s3 = inlined_call_operand.hbm [shape: f32[8,640], index: 3, kind: output, shape index: {}]  }
   0x1   :  { %9 = vsyncpa [#allocation4], 0  ;;  %s401_s12 = smov [#allocation2]   ;;  %s353_s16 = scalar_lea.hbm %s464_s2, 1280 }
   0x2   :  { %s19_s13 = sshll.u32 %s401_s12, 4  ;;  %p354_p0 = scmp.ne.s32.totalorder %s464_s2, %s353_s16  ;;  %s20_s13 = int_to_ptr.vmem [resolvable:$true] %s19_s13 }
   0x3   :  { %p357_p1 = scmp.lt.u32.totalorder %s353_s16, %s464_s2 }
   0x5   :  { %p359_p2 = pnand %p357_p1, %p354_p0 }
   0x7   :  { %362 = shalt.err (!%p359_p2)
}
   0x8   :  { %s363_s21 = scalar_lea.vmem %s20_s13, 1280  ;;  %p368_p4 = scmp.lt.s32.totalorder %s20_s13, %s20_s13 }
   0x9   :  { %p364_p3 = scmp.ne.s32.totalorder %s20_s13, %s363_s21  ;;  %p369_p5 = scmp.lt.s32.totalorder %s363_s21, %s363_s21 }
   0xb   :  { %p370_p6 = por %p369_p5, %p368_p4 }
   0xd   :  { %p371_p7 = pnand %p370_p6, %p364_p3 }
   0xf   :  { %374 = shalt.err (!%p371_p7)
}
  0x10   :  { %s402_s22 = smov 320   ;;  %s403_s23 = smov 20  }
  0x11   :  { %25 = dma.hbm_to_vmem [thread:$0]  %s464_s2, 1280, %s20_s13, [#allocation3], %s402_s22, %s402_s22, %s403_s23  }
  0x12   :  { %397 = dma.done.wait [#allocation3], 1280  }
  0x13   :  { %398 = vsyncadd [#allocation3], 4294966016  ;;  %v404_v0 = vmov 0   ;;  %vm100_vm0 = vcmask 1044480   ;;  %vm101_vm1 = vcmask 1045504   ;;  %v405_v1 = vmov 65535  }
  0x14   :  { %151 = vmatprep.mubr.bf16.mxu0 %v404_v0  ;;  %192 = vmatprep.mubr.bf16.mxu1 %v404_v0  ;;  %v102_v2 = vsel %vm100_vm0, 4294967295, %v405_v1  ;;  %v319_v3 = vld [vmem:[#allocation2 + $0x4] ss:$20 sps:$4 sm:$0xff]   ;;  %v321_v4 = vld [vmem:[#allocation2] ss:$20 sps:$4 sm:$0xff]   ;;  %vm96_vm2 = vcmask 220160  }
  0x15   :  { %318 = vset.pattern.permute.xlu0 %v404_v0  ;;  %v103_v5 = vsel %vm101_vm1, %v102_v2, 0  ;;  %119 = vmatprep.subr.bf16.mxu0 %v319_v3  ;;  %v322_v6 = vld [vmem:[#allocation2 + $0x2c] ss:$20 sps:$4 sm:$0x3f]   ;;  %v327_v11 = vld [vmem:[#allocation2 + $0x8] ss:$20 sps:$4 sm:$0xff]  }
  0x16   :  { %v324_v7 = vld [vmem:[#allocation2 + $0x28] ss:$20 sps:$4 sm:$0x3f]   ;;  %120 = vmatpush1.bf16.msra.mxu0 %v321_v4  ;;  %v325_v8 = vld [vmem:[#allocation2 + $0xc] ss:$20 sps:$4 sm:$0xff]   ;;  %v108_v9 = vand.u32 %v322_v6, %v103_v5  ;;  %v406_v18 = vmov 0.0  }
  0x17   :  { %v105_v10 = vand.u32 %v324_v7, %v103_v5  ;;  %160 = vmatprep.subr.bf16.mxu1 %v325_v8  ;;  %v30_v12 = vld [vmem:[%s462_s0] sm:$0xf]  ;;  %v328_v13 = vld [vmem:[#allocation2 + $0x34] ss:$20 sps:$4 sm:$0x3f]   ;;  %vm407_vm3 = vmmov 0  }
  0x18   :  { %v43_v14 = vld [vmem:[%s463_s1] sm:$0xff]  ;;  %121 = vmatprep.subr.bf16.mxu0 %v108_v9  ;;  %161 = vmatpush1.bf16.msra.mxu1 %v327_v11  ;;  %v114_v16 = vand.u32 %v328_v13, %v103_v5  ;;  %v332_v19 = vld [vmem:[#allocation2 + $0x38] ss:$20 sps:$4 sm:$0x3f]   ;;  %s408_s0 = smov [#allocation5]  }
  0x19   :  { %v330_v15 = vld [vmem:[#allocation2 + $0x10] ss:$20 sps:$4 sm:$0xff]   ;;  %46 = vperm.xlu0 %318, %v43_v14   ;;  %v117_v21 = vand.u32 %v332_v19, %v103_v5  ;;  %s277_s1 = sshll.u32 %s408_s0, 4  ;;  %s278_s1 = int_to_ptr.vmem [resolvable:$true] %s277_s1 }
  0x1a   :  { %122 = vmatpush1.bf16.msra.mxu0 %v105_v10  ;;  %v331_v17 = vld [vmem:[#allocation2 + $0x30] ss:$20 sps:$4 sm:$0x3f]   ;;  %162 = vmatprep.subr.bf16.mxu1 %v114_v16  ;;  %s375_s29 = scalar_lea.vmem %s278_s1, 640  ;;  %p380_p9 = scmp.lt.s32.totalorder %s278_s1, %s278_s1 }
  0x1b   :  { %302 = vmatprep.subr.bf16.mxu0 %v406_v18  ;;  %v111_v20 = vand.u32 %v331_v17, %v103_v5  ;;  %p376_p8 = scmp.ne.s32.totalorder %s278_s1, %s375_s29  ;;  %p381_p10 = scmp.lt.s32.totalorder %s375_s29, %s375_s29 }
  0x1d   :  { %296 = vmatmul.mubr.msk.bf16.vlgmr.msra.gmra.mrb[0].mxu0 %vm96_vm2, %v30_v12  ;;  %163 = vmatpush1.bf16.msra.mxu1 %v111_v20  ;;  %p382_p11 = por %p381_p10, %p380_p9 }
  0x1e   :  { %303 = vmatpush3.bf16.msra.mxu0 %v330_v15  ;;  %306 = vmatprep.mubr.msk.bf16.mxu0 %vm407_vm3, %v406_v18 }
  0x1f   :  { %304 = vmatprep.subr.bf16.mxu0 %v406_v18  ;;  %p383_p12 = pnand %p382_p11, %p376_p8 }
  0x20   :  { %297 = vmatmul.mubr.msk.bf16.vlgmr.msra.gmra.mrb[0].mxu1 %vm96_vm2, %v30_v12 }
  0x22   :  { %305 = vmatpush3.bf16.msra.mxu0 %v117_v21 }
  0x25   :  { %307 = vmatmul.mubr.msk.bf16.vlgmr.msra.gmra.mrb[4].mxu0 %vm96_vm2, %v30_v12 }
  0x98   :  { %v47_v22 = vpop.permute.xlu0 %46 }
  0xf0   :  { %v153_v23 = vpop.f32.mrb[0].mxu0 }
  0xf1   :  { %v154_v24 = vadd.f32 %v153_v23, %v47_v22  ;;  %v155_v25 = vpop.f32.mrb[1].mxu0 }
  0xf2   :  { %v156_v26 = vadd.f32 %v155_v25, %v47_v22  ;;  %v157_v27 = vpop.f32.mrb[2].mxu0 }
  0xf3   :  { %v241_v28 = vsub.f32 0.0, %v154_v24  ;;  %v158_v29 = vpop.f32.mrb[3].mxu0  ;;  %v194_v31 = vpop.f32.mrb[0].mxu1 }
  0xf4   :  { %v242_v30 = vsub.f32 0.0, %v156_v26  ;;  %v195_v33 = vadd.f32 %v194_v31, %v47_v22  ;;  %v196_v34 = vpop.f32.mrb[1].mxu1 }
  0xf5   :  { %v246_v32 = vmul.f32 1.442695, %v241_v28  ;;  %v197_v36 = vadd.f32 %v196_v34, %v47_v22  ;;  %v198_v37 = vpop.f32.mrb[2].mxu1 }
  0xf6   :  { %v248_v35 = vmul.f32 1.442695, %v242_v30  ;;  %v243_v38 = vsub.f32 0.0, %v195_v33  ;;  %v199_v39 = vpop.f32.mrb[3].mxu1 }
  0xf7   :  { %333 = vpow2.f32 %v246_v32  ;;  %v244_v40 = vsub.f32 0.0, %v197_v36 }
  0xf8   :  { %335 = vpow2.f32 %v248_v35  ;;  %v235_v41 = vpop.f32.mrb[4].mxu0  ;;  %v250_v42 = vmul.f32 1.442695, %v243_v38 }
  0xf9   :  { %v236_v43 = vadd.f32 %v235_v41, %v47_v22  ;;  %v308_v44 = vpop.f32.mrb[5].mxu0  ;;  %v252_v45 = vmul.f32 1.442695, %v244_v40 }
  0xfa   :  { %v238_v46 = vpop.f32.mrb[6].mxu0  ;;  %337 = vpow2.f32 %v250_v42 }
  0xfb   :  { %v245_v47 = vsub.f32 0.0, %v236_v43  ;;  %v309_v48 = vpop.f32.mrb[7].mxu0  ;;  %339 = vpow2.f32 %v252_v45 }
  0xfd   :  { %v254_v49 = vmul.f32 1.442695, %v245_v47 }
  0xff   :  { %341 = vpow2.f32 %v254_v49 }
 0x101   :  { %v334_v50 = vpop.eup %333 }
 0x102   :  { %v336_v51 = vpop.eup %335  ;;  %v256_v52 = vadd.f32 1.0, %v334_v50 }
 0x103   :  { %v257_v53 = vadd.f32 1.0, %v336_v51 }
 0x104   :  { %343 = vrcp.f32 %v256_v52  ;;  %v338_v54 = vpop.eup %337 }
 0x105   :  { %345 = vrcp.f32 %v257_v53  ;;  %v340_v55 = vpop.eup %339  ;;  %v258_v56 = vadd.f32 1.0, %v338_v54 }
 0x106   :  { %v259_v57 = vadd.f32 1.0, %v340_v55 }
 0x107   :  { %347 = vrcp.f32 %v258_v56 }
 0x108   :  { %349 = vrcp.f32 %v259_v57 }
 0x109   :  { %v342_v58 = vpop.eup %341 }
 0x10a   :  { %v260_v59 = vadd.f32 1.0, %v342_v58 }
 0x10c   :  { %351 = vrcp.f32 %v260_v59 }
 0x10e   :  { %v344_v60 = vpop.eup %343 }
 0x10f   :  { %v346_v61 = vpop.eup %345  ;;  %266 = vst [vmem:[#allocation5] sm:$0xff] %v344_v60 }
 0x110   :  { %267 = vst [vmem:[#allocation5 + $0x8] sm:$0xff] %v346_v61 }
 0x111   :  { %v348_v62 = vpop.eup %347 }
 0x112   :  { %v350_v63 = vpop.eup %349  ;;  %268 = vst [vmem:[#allocation5 + $0x10] sm:$0xff] %v348_v62 }
 0x113   :  { %269 = vst [vmem:[#allocation5 + $0x18] sm:$0xff] %v350_v63 }
 0x116   :  { %v352_v0 = vpop.eup %351 }
 0x117   :  { %270 = vst [vmem:[#allocation5 + $0x20] sm:$0xff] %v352_v0 }
 0x118   :  { %386 = shalt.err (!%p383_p12)
}
 0x119   :  { %s387_s5 = scalar_lea.hbm %s465_s3, 640 }
 0x11a   :  { %p388_p13 = scmp.ne.s32.totalorder %s465_s3, %s387_s5  ;;  %p391_p0 = scmp.lt.u32.totalorder %s387_s5, %s465_s3 }
 0x11c   :  { %p393_p1 = pnand %p391_p0, %p388_p13 }
 0x11e   :  { %396 = shalt.err (!%p393_p1)
}
 0x11f   :  { %280 = dma.vmem_to_hbm [thread:$0]  %s278_s1, 640, %s465_s3, [#allocation4]  }
 0x120   :  { %399 = dma.done.wait [#allocation4], 640  }
 0x121   :  { %400 = vsyncadd [#allocation4], 4294966656 }
 0x122   :  { %284 = vsyncpa [#allocation3], 1 }
 0x123   :  { %285 = vsyncpa [#allocation4], 1 }

</bundles_post_ra>
